<compile_context>
chip_gen: v6e
topology: v6e:2x2x1
jax: 0.10.0
libtpu: 0.0.40
codegen_flags: <defaults>
</compile_context>

<pallas_src>
import functools

import jax
import jax.numpy as jnp
import numpy as np
from jax.experimental import pallas as pl
from jax.experimental.pallas import tpu as pltpu


def _lora_vocab_embedding_kernel(w_rows_sm, la_ref, w_hbm, lb_ref, o_ref,
                                 base_rows, sem, *, unroll=8):
    # w_rows_sm: (Np,) int32 base-table row per token, SMEM (scalar prefetch)
    # la_ref:    (T, L*R) masked LoRA-A expand operand (auto-pipelined)
    # w_hbm:     (org_vocab + max_loras*extra_vocab, D) base table in HBM (pl.ANY)
    # lb_ref:    (L*R, D) lora_b, slot-major, resident in VMEM
    # o_ref:     (T, D) output block
    # base_rows: (2, T, D) VMEM scratch — double-buffered gathered base rows
    # sem:       (2,) DMA semaphores, one per buffer slot
    T, D = o_ref.shape
    i = pl.program_id(0)
    nsteps = pl.num_programs(0)

    def issue_tile(tile_idx, slot):
        base = tile_idx * T

        @pl.loop(0, T // unroll)
        def _(j):
            t0 = j * unroll
            for u in range(unroll):            # 8x unrolled descriptor issue
                t = t0 + u
                row = w_rows_sm[base + t]
                pltpu.make_async_copy(w_hbm.at[row],
                                      base_rows.at[slot, t],
                                      sem.at[slot]).start()

    # Prologue: issue tile 0 into slot 0.
    @pl.when(i == 0)
    def _():
        issue_tile(0, 0)

    # Prefetch next tile's rows into the other slot BEFORE waiting on this tile,
    # so the transfer overlaps this tile's compute + writeback.
    @pl.when(i + 1 < nsteps)
    def _():
        issue_tile(i + 1, (i + 1) % 2)

    slot = i % 2
    # Single aggregate wait for all T row copies of this tile: a (T, D)-shaped dummy
    # descriptor waits for exactly T * D * itemsize bytes on this slot's semaphore.
    pltpu.make_async_copy(base_rows.at[slot], base_rows.at[slot],
                          sem.at[slot]).wait()

    # Fused LoRA expand: one (T, L*R) x (L*R, D) matmul (operand pre-masked in wrapper).
    lora_out = jnp.dot(la_ref[...].astype(lb_ref.dtype), lb_ref[...],
                       preferred_element_type=jnp.float32)           # (T, D)
    o_ref[...] = (base_rows[slot].astype(jnp.float32) + lora_out).astype(o_ref.dtype)


def _default_block_tokens():
    """256 on v6e / v7x (256-wide MXU), 128 on v5e and anything unknown."""
    try:
        kind = jax.devices()[0].device_kind.lower()
    except Exception:
        return 128
    if ("v6" in kind) or ("v7" in kind) or ("7x" in kind):
        return 256
    return 128


def vocab_parallel_embedding_with_lora(x, lora_idx, base_weight, lora_a_2d,
                                       lora_b_rd, *, org_vocab, extra_vocab,
                                       max_loras, block_tokens=None):
    """x, lora_idx: (B, S) int32.  Returns (B, S, D) embeddings."""
    B, S = x.shape
    N = B * S
    V_total, D = base_weight.shape
    rank = lora_a_2d.shape[1]
    LR = max_loras * rank

    if block_tokens is None:
        block_tokens = _default_block_tokens()
    T = block_tokens
    assert T % 8 == 0

    x_flat = x.reshape(N).astype(jnp.int32)
    l_flat = lora_idx.reshape(N).astype(jnp.int32)

    pad = (-N) % T
    if pad:
        x_flat = jnp.pad(x_flat, (0, pad))                      # padded tokens -> row 0
        l_flat = jnp.pad(l_flat, (0, pad), constant_values=-1)  # padded tokens -> no LoRA
    Np = N + pad
    # TODO(synk): chunk this pallas_call for very long token streams (Np >~ 64K) so the
    # scalar-prefetch SMEM array (padded to the next power of two) cannot exhaust SMEM.

    has = l_flat >= 0
    l_eff = jnp.maximum(l_flat, 0)
    added = x_flat >= org_vocab

    # Base-table row per token (added-vocab tokens read the per-LoRA added rows).
    w_rows = jnp.where(has & added, x_flat + l_eff * extra_vocab, x_flat).astype(jnp.int32)

    # Masked LoRA expand operand, built wrapper-side: column block l_eff[t] carries the
    # gathered lora_a row, all other columns (and no-LoRA tokens) are zero.
    idx_a = jnp.where(has, x_flat + l_eff * (org_vocab + extra_vocab), 0)
    la = jnp.take(lora_a_2d, idx_a, axis=0)                          # (Np, R)
    col_slot = jnp.arange(LR, dtype=jnp.int32) // rank               # (L*R,)
    la_masked = jnp.where((col_slot[None, :] == l_eff[:, None]) & has[:, None],
                          jnp.tile(la, (1, max_loras)),
                          jnp.zeros((Np, LR), la.dtype))             # (Np, L*R)

    lb_flat = lora_b_rd.reshape(LR, D)                               # slot-major (L*R, D)

    kernel = functools.partial(_lora_vocab_embedding_kernel, unroll=8)

    out = pl.pallas_call(
        kernel,
        out_shape=jax.ShapeDtypeStruct((Np, D), base_weight.dtype),
        grid_spec=pltpu.PrefetchScalarGridSpec(
            num_scalar_prefetch=1,                                   # base-table row ids
            grid=(Np // T,),
            in_specs=[
                pl.BlockSpec((T, LR), lambda i, wr: (i, 0)),         # masked lora_a operand
                pl.BlockSpec(memory_space=pl.ANY),                   # base weight, HBM
                pl.BlockSpec((LR, D), lambda i, wr: (0, 0)),         # lora_b (tiny, resident)
            ],
            out_specs=pl.BlockSpec((T, D), lambda i, wr: (i, 0)),
            scratch_shapes=[
                pltpu.VMEM((2, T, D), base_weight.dtype),            # double-buffered rows
                pltpu.SemaphoreType.DMA((2,)),
            ],
        ),
        compiler_params=pltpu.CompilerParams(
            # Cross-grid-step DMA prefetch carry => must run sequentially on one core.
            dimension_semantics=("arbitrary",),
            vmem_limit_bytes=48 * 1024 * 1024,
        ),
    )(w_rows, la_masked, base_weight, lb_flat)

    return out[:N].reshape(B, S, D)


def _reference(x, lora_idx, base_weight, lora_a_2d, lora_b_rd,
               org_vocab, extra_vocab):
    """Pure-JAX reference with the module's forward semantics (l < 0 => no LoRA)."""
    has = (lora_idx >= 0).astype(jnp.int32)
    l_eff = jnp.maximum(lora_idx, 0)
    added = (x >= org_vocab).astype(jnp.int32)
    idx_b = x + l_eff * extra_vocab * added * has
    base_out = jnp.take(base_weight, idx_b, axis=0)                 # (B,S,D)
    idx_a = (x + l_eff * (org_vocab + extra_vocab)) * has
    la = jnp.take(lora_a_2d, idx_a, axis=0) * has[..., None].astype(lora_a_2d.dtype)
    lb = jnp.take(lora_b_rd, l_eff, axis=0)                         # (B,S,R,D)
    lora_out = jnp.einsum('bsr,bsrd->bsd', la, lb)
    return base_out + lora_out


if __name__ == "__main__":
    # Small synthetic config (mirrors the module __init__ shapes); B*S=512 tokens so the
    # grid has >= 2 steps even at block_tokens=256 (exercises the double-buffered gather).
    org_vocab = 256          # base_layer.org_vocab_size
    extra_vocab = 32         # lora_config.lora_extra_vocab_size
    max_loras = 2
    rank = 8                 # lora_config.max_lora_rank
    D = 128                  # base_layer.embedding_dim
    B, S = 4, 128

    key = jax.random.PRNGKey(0)
    k0, k1, k2, k3, k4, k5 = jax.random.split(key, 6)

    # base_layer.weight: org vocab rows + per-lora added-vocab rows
    base_weight = jax.random.normal(
        k0, (org_vocab + max_loras * extra_vocab, D), jnp.float32) * 0.02
    # lora_a_stacked: (max_loras, org_vocab + extra_vocab, rank) -> 2d view
    lora_a_stacked = jax.random.normal(
        k1, (max_loras, org_vocab + extra_vocab, rank), jnp.float32) * 0.1
    lora_a_2d = lora_a_stacked.reshape(max_loras * (org_vocab + extra_vocab), rank)
    # lora_b_stacked: (max_loras, 1, D, rank) -> glue transpose to (max_loras, rank, D)
    lora_b_stacked = jax.random.normal(
        k2, (max_loras, 1, D, rank), jnp.float32) * 0.1
    lora_b_rd = jnp.transpose(lora_b_stacked[:, 0, :, :], (0, 2, 1))  # (L, R, D)

    # Token ids: mix of regular tokens and added-vocab tokens.
    x_regular = jax.random.randint(k3, (B, S), 0, org_vocab)
    is_added = jax.random.bernoulli(k4, 0.25, (B, S))
    x_added = org_vocab + (x_regular % extra_vocab)
    x = jnp.where(is_added, x_added, x_regular).astype(jnp.int32)
    # Per-token LoRA slot index (punica token_lora_indices / embeddings_indices source).
    lora_idx = jax.random.randint(k5, (B, S), 0, max_loras).astype(jnp.int32)
    # A couple of no-LoRA tokens (slot -1): zero LoRA contribution, base offset 0.
    lora_idx = lora_idx.at[0, 0].set(-1)
    lora_idx = lora_idx.at[2, 17].set(-1)

    out = vocab_parallel_embedding_with_lora(
        x, lora_idx, base_weight, lora_a_2d, lora_b_rd,
        org_vocab=org_vocab, extra_vocab=extra_vocab, max_loras=max_loras)
    out = jax.block_until_ready(out)

    ref = _reference(x, lora_idx, base_weight, lora_a_2d, lora_b_rd,
                     org_vocab, extra_vocab)
    np.testing.assert_allclose(np.asarray(out), np.asarray(ref),
                               rtol=1e-5, atol=1e-5)

    # TODO(synk): set_lora / reset_lora / create_lora_weights copy-back bookkeeping and
    # the in-place x.add_(...) mutation are host-side state management, not compute.
    print("KERNEL_OK")
</pallas_src>

<mosaic_0001>
module attributes {stable_mosaic.version = 11 : i64} {
  func.func @_lora_vocab_embedding_kernel(%arg0: i32, %arg1: memref<512xi32, #tpu.memory_space<smem>>, %arg2: memref<128x16xf32, #tpu.memory_space<vmem>>, %arg3: memref<320x128xf32, #tpu.memory_space<any>>, %arg4: memref<16x128xf32, #tpu.memory_space<vmem>>, %arg5: memref<128x128xf32, #tpu.memory_space<vmem>>, %arg6: memref<2x128x128xf32, #tpu.memory_space<vmem>>, %arg7: memref<2x!tpu.dma_semaphore, #tpu.memory_space<semaphore_mem>>) attributes {dimension_semantics = [#tpu.dimension_semantics<arbitrary>], iteration_bounds = array<i64: 4>, scalar_prefetch = 1 : i64, scratch_operands = 2 : i64, tpu.core_type = #tpu.core_type<tc>, window_params = [{transform_indices = @transform_0, window_bounds = array<i64: 128, 16>}, {}, {pipeline_mode = #tpu.pipeline_mode<synchronous>, transform_indices = @transform_2, window_bounds = array<i64: 16, 128>}, {transform_indices = @transform_3, window_bounds = array<i64: 128, 128>}]} {
    %c0_i32 = arith.constant 0 : i32
    %0 = arith.cmpi eq, %arg0, %c0_i32 : i32
    %1 = arith.extui %0 : i1 to i32
    %c0_i32_0 = arith.constant 0 : i32
    %2 = arith.cmpi ne, %1, %c0_i32_0 : i32
    scf.if %2 {
      %c0_i32_18 = arith.constant 0 : i32
      %c16_i32 = arith.constant 16 : i32
      %31 = arith.addi %c0_i32_18, %c16_i32 : i32
      %c1_i32_19 = arith.constant 1 : i32
      scf.for %arg8 = %c0_i32_18 to %31 step %c1_i32_19  : i32 {
        %c1_i32_21 = arith.constant 1 : i32
        %32 = arith.muli %arg8, %c1_i32_21 : i32
        %c0_i32_22 = arith.constant 0 : i32
        %33 = arith.addi %c0_i32_22, %32 : i32
        %c8_i32 = arith.constant 8 : i32
        %34 = arith.muli %33, %c8_i32 : i32
        %c0_i32_23 = arith.constant 0 : i32
        %35 = arith.addi %34, %c0_i32_23 : i32
        %c0_i32_24 = arith.constant 0 : i32
        %36 = arith.addi %c0_i32_24, %35 : i32
        %37 = arith.index_cast %36 : i32 to index
        %38 = memref.load %arg1[%37] : memref<512xi32, #tpu.memory_space<smem>>
        %c0_i32_25 = arith.constant 0 : i32
        %c0_i32_26 = arith.constant 0 : i32
        %c0_i32_27 = arith.constant 0 : i32
        %39 = tpu.memref_slice %arg3[%38, %c0_i32_27] : memref<320x128xf32, #tpu.memory_space<any>> -> memref<1x128xf32, #tpu.memory_space<any>>
        %40 = tpu.memref_squeeze %39 : memref<1x128xf32, #tpu.memory_space<any>> -> memref<128xf32, #tpu.memory_space<any>>
        %c0_i32_28 = arith.constant 0 : i32
        %41 = tpu.memref_slice %arg6[%c0_i32_25, %35, %c0_i32_28] : memref<2x128x128xf32, #tpu.memory_space<vmem>> -> memref<1x1x128xf32, #tpu.memory_space<vmem>>
        %42 = tpu.memref_squeeze %41 : memref<1x1x128xf32, #tpu.memory_space<vmem>> -> memref<128xf32, #tpu.memory_space<vmem>>
        %43 = tpu.memref_slice %arg7[%c0_i32_26] : memref<2x!tpu.dma_semaphore, #tpu.memory_space<semaphore_mem>> -> memref<1x!tpu.dma_semaphore, #tpu.memory_space<semaphore_mem>>
        %44 = tpu.memref_squeeze %43 : memref<1x!tpu.dma_semaphore, #tpu.memory_space<semaphore_mem>> -> memref<!tpu.dma_semaphore, #tpu.memory_space<semaphore_mem>>
        tpu.enqueue_dma source(%40 : memref<128xf32, #tpu.memory_space<any>>) target(%42 : memref<128xf32, #tpu.memory_space<vmem>>) target_semaphore(%44 : memref<!tpu.dma_semaphore, #tpu.memory_space<semaphore_mem>>)
        %c1_i32_29 = arith.constant 1 : i32
        %45 = arith.addi %34, %c1_i32_29 : i32
        %c0_i32_30 = arith.constant 0 : i32
        %46 = arith.addi %c0_i32_30, %45 : i32
        %47 = arith.index_cast %46 : i32 to index
        %48 = memref.load %arg1[%47] : memref<512xi32, #tpu.memory_space<smem>>
        %c0_i32_31 = arith.constant 0 : i32
        %c0_i32_32 = arith.constant 0 : i32
        %c0_i32_33 = arith.constant 0 : i32
        %49 = tpu.memref_slice %arg3[%48, %c0_i32_33] : memref<320x128xf32, #tpu.memory_space<any>> -> memref<1x128xf32, #tpu.memory_space<any>>
        %50 = tpu.memref_squeeze %49 : memref<1x128xf32, #tpu.memory_space<any>> -> memref<128xf32, #tpu.memory_space<any>>
        %c0_i32_34 = arith.constant 0 : i32
        %51 = tpu.memref_slice %arg6[%c0_i32_31, %45, %c0_i32_34] : memref<2x128x128xf32, #tpu.memory_space<vmem>> -> memref<1x1x128xf32, #tpu.memory_space<vmem>>
        %52 = tpu.memref_squeeze %51 : memref<1x1x128xf32, #tpu.memory_space<vmem>> -> memref<128xf32, #tpu.memory_space<vmem>>
        %53 = tpu.memref_slice %arg7[%c0_i32_32] : memref<2x!tpu.dma_semaphore, #tpu.memory_space<semaphore_mem>> -> memref<1x!tpu.dma_semaphore, #tpu.memory_space<semaphore_mem>>
        %54 = tpu.memref_squeeze %53 : memref<1x!tpu.dma_semaphore, #tpu.memory_space<semaphore_mem>> -> memref<!tpu.dma_semaphore, #tpu.memory_space<semaphore_mem>>
        tpu.enqueue_dma source(%50 : memref<128xf32, #tpu.memory_space<any>>) target(%52 : memref<128xf32, #tpu.memory_space<vmem>>) target_semaphore(%54 : memref<!tpu.dma_semaphore, #tpu.memory_space<semaphore_mem>>)
        %c2_i32_35 = arith.constant 2 : i32
        %55 = arith.addi %34, %c2_i32_35 : i32
        %c0_i32_36 = arith.constant 0 : i32
        %56 = arith.addi %c0_i32_36, %55 : i32
        %57 = arith.index_cast %56 : i32 to index
        %58 = memref.load %arg1[%57] : memref<512xi32, #tpu.memory_space<smem>>
        %c0_i32_37 = arith.constant 0 : i32
        %c0_i32_38 = arith.constant 0 : i32
        %c0_i32_39 = arith.constant 0 : i32
        %59 = tpu.memref_slice %arg3[%58, %c0_i32_39] : memref<320x128xf32, #tpu.memory_space<any>> -> memref<1x128xf32, #tpu.memory_space<any>>
        %60 = tpu.memref_squeeze %59 : memref<1x128xf32, #tpu.memory_space<any>> -> memref<128xf32, #tpu.memory_space<any>>
        %c0_i32_40 = arith.constant 0 : i32
        %61 = tpu.memref_slice %arg6[%c0_i32_37, %55, %c0_i32_40] : memref<2x128x128xf32, #tpu.memory_space<vmem>> -> memref<1x1x128xf32, #tpu.memory_space<vmem>>
        %62 = tpu.memref_squeeze %61 : memref<1x1x128xf32, #tpu.memory_space<vmem>> -> memref<128xf32, #tpu.memory_space<vmem>>
        %63 = tpu.memref_slice %arg7[%c0_i32_38] : memref<2x!tpu.dma_semaphore, #tpu.memory_space<semaphore_mem>> -> memref<1x!tpu.dma_semaphore, #tpu.memory_space<semaphore_mem>>
        %64 = tpu.memref_squeeze %63 : memref<1x!tpu.dma_semaphore, #tpu.memory_space<semaphore_mem>> -> memref<!tpu.dma_semaphore, #tpu.memory_space<semaphore_mem>>
        tpu.enqueue_dma source(%60 : memref<128xf32, #tpu.memory_space<any>>) target(%62 : memref<128xf32, #tpu.memory_space<vmem>>) target_semaphore(%64 : memref<!tpu.dma_semaphore, #tpu.memory_space<semaphore_mem>>)
        %c3_i32 = arith.constant 3 : i32
        %65 = arith.addi %34, %c3_i32 : i32
        %c0_i32_41 = arith.constant 0 : i32
        %66 = arith.addi %c0_i32_41, %65 : i32
        %67 = arith.index_cast %66 : i32 to index
        %68 = memref.load %arg1[%67] : memref<512xi32, #tpu.memory_space<smem>>
        %c0_i32_42 = arith.constant 0 : i32
        %c0_i32_43 = arith.constant 0 : i32
        %c0_i32_44 = arith.constant 0 : i32
        %69 = tpu.memref_slice %arg3[%68, %c0_i32_44] : memref<320x128xf32, #tpu.memory_space<any>> -> memref<1x128xf32, #tpu.memory_space<any>>
        %70 = tpu.memref_squeeze %69 : memref<1x128xf32, #tpu.memory_space<any>> -> memref<128xf32, #tpu.memory_space<any>>
        %c0_i32_45 = arith.constant 0 : i32
        %71 = tpu.memref_slice %arg6[%c0_i32_42, %65, %c0_i32_45] : memref<2x128x128xf32, #tpu.memory_space<vmem>> -> memref<1x1x128xf32, #tpu.memory_space<vmem>>
        %72 = tpu.memref_squeeze %71 : memref<1x1x128xf32, #tpu.memory_space<vmem>> -> memref<128xf32, #tpu.memory_space<vmem>>
        %73 = tpu.memref_slice %arg7[%c0_i32_43] : memref<2x!tpu.dma_semaphore, #tpu.memory_space<semaphore_mem>> -> memref<1x!tpu.dma_semaphore, #tpu.memory_space<semaphore_mem>>
        %74 = tpu.memref_squeeze %73 : memref<1x!tpu.dma_semaphore, #tpu.memory_space<semaphore_mem>> -> memref<!tpu.dma_semaphore, #tpu.memory_space<semaphore_mem>>
        tpu.enqueue_dma source(%70 : memref<128xf32, #tpu.memory_space<any>>) target(%72 : memref<128xf32, #tpu.memory_space<vmem>>) target_semaphore(%74 : memref<!tpu.dma_semaphore, #tpu.memory_space<semaphore_mem>>)
        %c4_i32_46 = arith.constant 4 : i32
        %75 = arith.addi %34, %c4_i32_46 : i32
        %c0_i32_47 = arith.constant 0 : i32
        %76 = arith.addi %c0_i32_47, %75 : i32
        %77 = arith.index_cast %76 : i32 to index
        %78 = memref.load %arg1[%77] : memref<512xi32, #tpu.memory_space<smem>>
        %c0_i32_48 = arith.constant 0 : i32
        %c0_i32_49 = arith.constant 0 : i32
        %c0_i32_50 = arith.constant 0 : i32
        %79 = tpu.memref_slice %arg3[%78, %c0_i32_50] : memref<320x128xf32, #tpu.memory_space<any>> -> memref<1x128xf32, #tpu.memory_space<any>>
        %80 = tpu.memref_squeeze %79 : memref<1x128xf32, #tpu.memory_space<any>> -> memref<128xf32, #tpu.memory_space<any>>
        %c0_i32_51 = arith.constant 0 : i32
        %81 = tpu.memref_slice %arg6[%c0_i32_48, %75, %c0_i32_51] : memref<2x128x128xf32, #tpu.memory_space<vmem>> -> memref<1x1x128xf32, #tpu.memory_space<vmem>>
        %82 = tpu.memref_squeeze %81 : memref<1x1x128xf32, #tpu.memory_space<vmem>> -> memref<128xf32, #tpu.memory_space<vmem>>
        %83 = tpu.memref_slice %arg7[%c0_i32_49] : memref<2x!tpu.dma_semaphore, #tpu.memory_space<semaphore_mem>> -> memref<1x!tpu.dma_semaphore, #tpu.memory_space<semaphore_mem>>
        %84 = tpu.memref_squeeze %83 : memref<1x!tpu.dma_semaphore, #tpu.memory_space<semaphore_mem>> -> memref<!tpu.dma_semaphore, #tpu.memory_space<semaphore_mem>>
        tpu.enqueue_dma source(%80 : memref<128xf32, #tpu.memory_space<any>>) target(%82 : memref<128xf32, #tpu.memory_space<vmem>>) target_semaphore(%84 : memref<!tpu.dma_semaphore, #tpu.memory_space<semaphore_mem>>)
        %c5_i32 = arith.constant 5 : i32
        %85 = arith.addi %34, %c5_i32 : i32
        %c0_i32_52 = arith.constant 0 : i32
        %86 = arith.addi %c0_i32_52, %85 : i32
        %87 = arith.index_cast %86 : i32 to index
        %88 = memref.load %arg1[%87] : memref<512xi32, #tpu.memory_space<smem>>
        %c0_i32_53 = arith.constant 0 : i32
        %c0_i32_54 = arith.constant 0 : i32
        %c0_i32_55 = arith.constant 0 : i32
        %89 = tpu.memref_slice %arg3[%88, %c0_i32_55] : memref<320x128xf32, #tpu.memory_space<any>> -> memref<1x128xf32, #tpu.memory_space<any>>
        %90 = tpu.memref_squeeze %89 : memref<1x128xf32, #tpu.memory_space<any>> -> memref<128xf32, #tpu.memory_space<any>>
        %c0_i32_56 = arith.constant 0 : i32
        %91 = tpu.memref_slice %arg6[%c0_i32_53, %85, %c0_i32_56] : memref<2x128x128xf32, #tpu.memory_space<vmem>> -> memref<1x1x128xf32, #tpu.memory_space<vmem>>
        %92 = tpu.memref_squeeze %91 : memref<1x1x128xf32, #tpu.memory_space<vmem>> -> memref<128xf32, #tpu.memory_space<vmem>>
        %93 = tpu.memref_slice %arg7[%c0_i32_54] : memref<2x!tpu.dma_semaphore, #tpu.memory_space<semaphore_mem>> -> memref<1x!tpu.dma_semaphore, #tpu.memory_space<semaphore_mem>>
        %94 = tpu.memref_squeeze %93 : memref<1x!tpu.dma_semaphore, #tpu.memory_space<semaphore_mem>> -> memref<!tpu.dma_semaphore, #tpu.memory_space<semaphore_mem>>
        tpu.enqueue_dma source(%90 : memref<128xf32, #tpu.memory_space<any>>) target(%92 : memref<128xf32, #tpu.memory_space<vmem>>) target_semaphore(%94 : memref<!tpu.dma_semaphore, #tpu.memory_space<semaphore_mem>>)
        %c6_i32 = arith.constant 6 : i32
        %95 = arith.addi %34, %c6_i32 : i32
        %c0_i32_57 = arith.constant 0 : i32
        %96 = arith.addi %c0_i32_57, %95 : i32
        %97 = arith.index_cast %96 : i32 to index
        %98 = memref.load %arg1[%97] : memref<512xi32, #tpu.memory_space<smem>>
        %c0_i32_58 = arith.constant 0 : i32
        %c0_i32_59 = arith.constant 0 : i32
        %c0_i32_60 = arith.constant 0 : i32
        %99 = tpu.memref_slice %arg3[%98, %c0_i32_60] : memref<320x128xf32, #tpu.memory_space<any>> -> memref<1x128xf32, #tpu.memory_space<any>>
        %100 = tpu.memref_squeeze %99 : memref<1x128xf32, #tpu.memory_space<any>> -> memref<128xf32, #tpu.memory_space<any>>
        %c0_i32_61 = arith.constant 0 : i32
        %101 = tpu.memref_slice %arg6[%c0_i32_58, %95, %c0_i32_61] : memref<2x128x128xf32, #tpu.memory_space<vmem>> -> memref<1x1x128xf32, #tpu.memory_space<vmem>>
        %102 = tpu.memref_squeeze %101 : memref<1x1x128xf32, #tpu.memory_space<vmem>> -> memref<128xf32, #tpu.memory_space<vmem>>
        %103 = tpu.memref_slice %arg7[%c0_i32_59] : memref<2x!tpu.dma_semaphore, #tpu.memory_space<semaphore_mem>> -> memref<1x!tpu.dma_semaphore, #tpu.memory_space<semaphore_mem>>
        %104 = tpu.memref_squeeze %103 : memref<1x!tpu.dma_semaphore, #tpu.memory_space<semaphore_mem>> -> memref<!tpu.dma_semaphore, #tpu.memory_space<semaphore_mem>>
        tpu.enqueue_dma source(%100 : memref<128xf32, #tpu.memory_space<any>>) target(%102 : memref<128xf32, #tpu.memory_space<vmem>>) target_semaphore(%104 : memref<!tpu.dma_semaphore, #tpu.memory_space<semaphore_mem>>)
        %c7_i32 = arith.constant 7 : i32
        %105 = arith.addi %34, %c7_i32 : i32
        %c0_i32_62 = arith.constant 0 : i32
        %106 = arith.addi %c0_i32_62, %105 : i32
        %107 = arith.index_cast %106 : i32 to index
        %108 = memref.load %arg1[%107] : memref<512xi32, #tpu.memory_space<smem>>
        %c0_i32_63 = arith.constant 0 : i32
        %c0_i32_64 = arith.constant 0 : i32
        %c0_i32_65 = arith.constant 0 : i32
        %109 = tpu.memref_slice %arg3[%108, %c0_i32_65] : memref<320x128xf32, #tpu.memory_space<any>> -> memref<1x128xf32, #tpu.memory_space<any>>
        %110 = tpu.memref_squeeze %109 : memref<1x128xf32, #tpu.memory_space<any>> -> memref<128xf32, #tpu.memory_space<any>>
        %c0_i32_66 = arith.constant 0 : i32
        %111 = tpu.memref_slice %arg6[%c0_i32_63, %105, %c0_i32_66] : memref<2x128x128xf32, #tpu.memory_space<vmem>> -> memref<1x1x128xf32, #tpu.memory_space<vmem>>
        %112 = tpu.memref_squeeze %111 : memref<1x1x128xf32, #tpu.memory_space<vmem>> -> memref<128xf32, #tpu.memory_space<vmem>>
        %113 = tpu.memref_slice %arg7[%c0_i32_64] : memref<2x!tpu.dma_semaphore, #tpu.memory_space<semaphore_mem>> -> memref<1x!tpu.dma_semaphore, #tpu.memory_space<semaphore_mem>>
        %114 = tpu.memref_squeeze %113 : memref<1x!tpu.dma_semaphore, #tpu.memory_space<semaphore_mem>> -> memref<!tpu.dma_semaphore, #tpu.memory_space<semaphore_mem>>
        tpu.enqueue_dma source(%110 : memref<128xf32, #tpu.memory_space<any>>) target(%112 : memref<128xf32, #tpu.memory_space<vmem>>) target_semaphore(%114 : memref<!tpu.dma_semaphore, #tpu.memory_space<semaphore_mem>>)
      }
      %c16_i32_20 = arith.constant 16 : i32
    } else {
    }
    %c1_i32 = arith.constant 1 : i32
    %3 = arith.addi %arg0, %c1_i32 : i32
    %c4_i32 = arith.constant 4 : i32
    %4 = arith.cmpi slt, %3, %c4_i32 : i32
    %5 = arith.extui %4 : i1 to i32
    %c0_i32_1 = arith.constant 0 : i32
    %6 = arith.cmpi ne, %5, %c0_i32_1 : i32
    scf.if %6 {
      %c1_i32_18 = arith.constant 1 : i32
      %31 = arith.addi %arg0, %c1_i32_18 : i32
      %c1_i32_19 = arith.constant 1 : i32
      %32 = arith.addi %arg0, %c1_i32_19 : i32
      %c2_i32_20 = arith.constant 2 : i32
      %c0_i32_21 = arith.constant 0 : i32
      %33 = arith.cmpi eq, %c2_i32_20, %c0_i32_21 : i32
      %c1_i32_22 = arith.constant 1 : i32
      %34 = arith.select %33, %c1_i32_22, %c2_i32_20 : i32
      %35 = arith.remsi %32, %34 : i32
      %c0_i32_23 = arith.constant 0 : i32
      %36 = arith.cmpi ne, %35, %c0_i32_23 : i32
      %c0_i32_24 = arith.constant 0 : i32
      %37 = arith.cmpi slt, %35, %c0_i32_24 : i32
      %c0_i32_25 = arith.constant 0 : i32
      %38 = arith.cmpi slt, %34, %c0_i32_25 : i32
      %39 = arith.xori %37, %38 : i1
      %40 = arith.andi %39, %36 : i1
      %41 = arith.addi %35, %34 : i32
      %42 = arith.select %40, %41, %35 : i32
      %c128_i32 = arith.constant 128 : i32
      %43 = arith.muli %31, %c128_i32 : i32
      %c0_i32_26 = arith.constant 0 : i32
      %c16_i32 = arith.constant 16 : i32
      %44 = arith.addi %c0_i32_26, %c16_i32 : i32
      %c1_i32_27 = arith.constant 1 : i32
      scf.for %arg8 = %c0_i32_26 to %44 step %c1_i32_27  : i32 {
        %c1_i32_29 = arith.constant 1 : i32
        %45 = arith.muli %arg8, %c1_i32_29 : i32
        %c0_i32_30 = arith.constant 0 : i32
        %46 = arith.addi %c0_i32_30, %45 : i32
        %c8_i32 = arith.constant 8 : i32
        %47 = arith.muli %46, %c8_i32 : i32
        %c0_i32_31 = arith.constant 0 : i32
        %48 = arith.addi %47, %c0_i32_31 : i32
        %49 = arith.addi %43, %48 : i32
        %50 = arith.index_cast %49 : i32 to index
        %51 = memref.load %arg1[%50] : memref<512xi32, #tpu.memory_space<smem>>
        %c0_i32_32 = arith.constant 0 : i32
        %52 = tpu.memref_slice %arg3[%51, %c0_i32_32] : memref<320x128xf32, #tpu.memory_space<any>> -> memref<1x128xf32, #tpu.memory_space<any>>
        %53 = tpu.memref_squeeze %52 : memref<1x128xf32, #tpu.memory_space<any>> -> memref<128xf32, #tpu.memory_space<any>>
        %c0_i32_33 = arith.constant 0 : i32
        %54 = tpu.memref_slice %arg6[%42, %48, %c0_i32_33] : memref<2x128x128xf32, #tpu.memory_space<vmem>> -> memref<1x1x128xf32, #tpu.memory_space<vmem>>
        %55 = tpu.memref_squeeze %54 : memref<1x1x128xf32, #tpu.memory_space<vmem>> -> memref<128xf32, #tpu.memory_space<vmem>>
        %56 = tpu.memref_slice %arg7[%42] : memref<2x!tpu.dma_semaphore, #tpu.memory_space<semaphore_mem>> -> memref<1x!tpu.dma_semaphore, #tpu.memory_space<semaphore_mem>>
        %57 = tpu.memref_squeeze %56 : memref<1x!tpu.dma_semaphore, #tpu.memory_space<semaphore_mem>> -> memref<!tpu.dma_semaphore, #tpu.memory_space<semaphore_mem>>
        tpu.enqueue_dma source(%53 : memref<128xf32, #tpu.memory_space<any>>) target(%55 : memref<128xf32, #tpu.memory_space<vmem>>) target_semaphore(%57 : memref<!tpu.dma_semaphore, #tpu.memory_space<semaphore_mem>>)
        %c1_i32_34 = arith.constant 1 : i32
        %58 = arith.addi %47, %c1_i32_34 : i32
        %59 = arith.addi %43, %58 : i32
        %60 = arith.index_cast %59 : i32 to index
        %61 = memref.load %arg1[%60] : memref<512xi32, #tpu.memory_space<smem>>
        %c0_i32_35 = arith.constant 0 : i32
        %62 = tpu.memref_slice %arg3[%61, %c0_i32_35] : memref<320x128xf32, #tpu.memory_space<any>> -> memref<1x128xf32, #tpu.memory_space<any>>
        %63 = tpu.memref_squeeze %62 : memref<1x128xf32, #tpu.memory_space<any>> -> memref<128xf32, #tpu.memory_space<any>>
        %c0_i32_36 = arith.constant 0 : i32
        %64 = tpu.memref_slice %arg6[%42, %58, %c0_i32_36] : memref<2x128x128xf32, #tpu.memory_space<vmem>> -> memref<1x1x128xf32, #tpu.memory_space<vmem>>
        %65 = tpu.memref_squeeze %64 : memref<1x1x128xf32, #tpu.memory_space<vmem>> -> memref<128xf32, #tpu.memory_space<vmem>>
        %66 = tpu.memref_slice %arg7[%42] : memref<2x!tpu.dma_semaphore, #tpu.memory_space<semaphore_mem>> -> memref<1x!tpu.dma_semaphore, #tpu.memory_space<semaphore_mem>>
        %67 = tpu.memref_squeeze %66 : memref<1x!tpu.dma_semaphore, #tpu.memory_space<semaphore_mem>> -> memref<!tpu.dma_semaphore, #tpu.memory_space<semaphore_mem>>
        tpu.enqueue_dma source(%63 : memref<128xf32, #tpu.memory_space<any>>) target(%65 : memref<128xf32, #tpu.memory_space<vmem>>) target_semaphore(%67 : memref<!tpu.dma_semaphore, #tpu.memory_space<semaphore_mem>>)
        %c2_i32_37 = arith.constant 2 : i32
        %68 = arith.addi %47, %c2_i32_37 : i32
        %69 = arith.addi %43, %68 : i32
        %70 = arith.index_cast %69 : i32 to index
        %71 = memref.load %arg1[%70] : memref<512xi32, #tpu.memory_space<smem>>
        %c0_i32_38 = arith.constant 0 : i32
        %72 = tpu.memref_slice %arg3[%71, %c0_i32_38] : memref<320x128xf32, #tpu.memory_space<any>> -> memref<1x128xf32, #tpu.memory_space<any>>
        %73 = tpu.memref_squeeze %72 : memref<1x128xf32, #tpu.memory_space<any>> -> memref<128xf32, #tpu.memory_space<any>>
        %c0_i32_39 = arith.constant 0 : i32
        %74 = tpu.memref_slice %arg6[%42, %68, %c0_i32_39] : memref<2x128x128xf32, #tpu.memory_space<vmem>> -> memref<1x1x128xf32, #tpu.memory_space<vmem>>
        %75 = tpu.memref_squeeze %74 : memref<1x1x128xf32, #tpu.memory_space<vmem>> -> memref<128xf32, #tpu.memory_space<vmem>>
        %76 = tpu.memref_slice %arg7[%42] : memref<2x!tpu.dma_semaphore, #tpu.memory_space<semaphore_mem>> -> memref<1x!tpu.dma_semaphore, #tpu.memory_space<semaphore_mem>>
        %77 = tpu.memref_squeeze %76 : memref<1x!tpu.dma_semaphore, #tpu.memory_space<semaphore_mem>> -> memref<!tpu.dma_semaphore, #tpu.memory_space<semaphore_mem>>
        tpu.enqueue_dma source(%73 : memref<128xf32, #tpu.memory_space<any>>) target(%75 : memref<128xf32, #tpu.memory_space<vmem>>) target_semaphore(%77 : memref<!tpu.dma_semaphore, #tpu.memory_space<semaphore_mem>>)
        %c3_i32 = arith.constant 3 : i32
        %78 = arith.addi %47, %c3_i32 : i32
        %79 = arith.addi %43, %78 : i32
        %80 = arith.index_cast %79 : i32 to index
        %81 = memref.load %arg1[%80] : memref<512xi32, #tpu.memory_space<smem>>
        %c0_i32_40 = arith.constant 0 : i32
        %82 = tpu.memref_slice %arg3[%81, %c0_i32_40] : memref<320x128xf32, #tpu.memory_space<any>> -> memref<1x128xf32, #tpu.memory_space<any>>
        %83 = tpu.memref_squeeze %82 : memref<1x128xf32, #tpu.memory_space<any>> -> memref<128xf32, #tpu.memory_space<any>>
        %c0_i32_41 = arith.constant 0 : i32
        %84 = tpu.memref_slice %arg6[%42, %78, %c0_i32_41] : memref<2x128x128xf32, #tpu.memory_space<vmem>> -> memref<1x1x128xf32, #tpu.memory_space<vmem>>
        %85 = tpu.memref_squeeze %84 : memref<1x1x128xf32, #tpu.memory_space<vmem>> -> memref<128xf32, #tpu.memory_space<vmem>>
        %86 = tpu.memref_slice %arg7[%42] : memref<2x!tpu.dma_semaphore, #tpu.memory_space<semaphore_mem>> -> memref<1x!tpu.dma_semaphore, #tpu.memory_space<semaphore_mem>>
        %87 = tpu.memref_squeeze %86 : memref<1x!tpu.dma_semaphore, #tpu.memory_space<semaphore_mem>> -> memref<!tpu.dma_semaphore, #tpu.memory_space<semaphore_mem>>
        tpu.enqueue_dma source(%83 : memref<128xf32, #tpu.memory_space<any>>) target(%85 : memref<128xf32, #tpu.memory_space<vmem>>) target_semaphore(%87 : memref<!tpu.dma_semaphore, #tpu.memory_space<semaphore_mem>>)
        %c4_i32_42 = arith.constant 4 : i32
        %88 = arith.addi %47, %c4_i32_42 : i32
        %89 = arith.addi %43, %88 : i32
        %90 = arith.index_cast %89 : i32 to index
        %91 = memref.load %arg1[%90] : memref<512xi32, #tpu.memory_space<smem>>
        %c0_i32_43 = arith.constant 0 : i32
        %92 = tpu.memref_slice %arg3[%91, %c0_i32_43] : memref<320x128xf32, #tpu.memory_space<any>> -> memref<1x128xf32, #tpu.memory_space<any>>
        %93 = tpu.memref_squeeze %92 : memref<1x128xf32, #tpu.memory_space<any>> -> memref<128xf32, #tpu.memory_space<any>>
        %c0_i32_44 = arith.constant 0 : i32
        %94 = tpu.memref_slice %arg6[%42, %88, %c0_i32_44] : memref<2x128x128xf32, #tpu.memory_space<vmem>> -> memref<1x1x128xf32, #tpu.memory_space<vmem>>
        %95 = tpu.memref_squeeze %94 : memref<1x1x128xf32, #tpu.memory_space<vmem>> -> memref<128xf32, #tpu.memory_space<vmem>>
        %96 = tpu.memref_slice %arg7[%42] : memref<2x!tpu.dma_semaphore, #tpu.memory_space<semaphore_mem>> -> memref<1x!tpu.dma_semaphore, #tpu.memory_space<semaphore_mem>>
        %97 = tpu.memref_squeeze %96 : memref<1x!tpu.dma_semaphore, #tpu.memory_space<semaphore_mem>> -> memref<!tpu.dma_semaphore, #tpu.memory_space<semaphore_mem>>
        tpu.enqueue_dma source(%93 : memref<128xf32, #tpu.memory_space<any>>) target(%95 : memref<128xf32, #tpu.memory_space<vmem>>) target_semaphore(%97 : memref<!tpu.dma_semaphore, #tpu.memory_space<semaphore_mem>>)
        %c5_i32 = arith.constant 5 : i32
        %98 = arith.addi %47, %c5_i32 : i32
        %99 = arith.addi %43, %98 : i32
        %100 = arith.index_cast %99 : i32 to index
        %101 = memref.load %arg1[%100] : memref<512xi32, #tpu.memory_space<smem>>
        %c0_i32_45 = arith.constant 0 : i32
        %102 = tpu.memref_slice %arg3[%101, %c0_i32_45] : memref<320x128xf32, #tpu.memory_space<any>> -> memref<1x128xf32, #tpu.memory_space<any>>
        %103 = tpu.memref_squeeze %102 : memref<1x128xf32, #tpu.memory_space<any>> -> memref<128xf32, #tpu.memory_space<any>>
        %c0_i32_46 = arith.constant 0 : i32
        %104 = tpu.memref_slice %arg6[%42, %98, %c0_i32_46] : memref<2x128x128xf32, #tpu.memory_space<vmem>> -> memref<1x1x128xf32, #tpu.memory_space<vmem>>
        %105 = tpu.memref_squeeze %104 : memref<1x1x128xf32, #tpu.memory_space<vmem>> -> memref<128xf32, #tpu.memory_space<vmem>>
        %106 = tpu.memref_slice %arg7[%42] : memref<2x!tpu.dma_semaphore, #tpu.memory_space<semaphore_mem>> -> memref<1x!tpu.dma_semaphore, #tpu.memory_space<semaphore_mem>>
        %107 = tpu.memref_squeeze %106 : memref<1x!tpu.dma_semaphore, #tpu.memory_space<semaphore_mem>> -> memref<!tpu.dma_semaphore, #tpu.memory_space<semaphore_mem>>
        tpu.enqueue_dma source(%103 : memref<128xf32, #tpu.memory_space<any>>) target(%105 : memref<128xf32, #tpu.memory_space<vmem>>) target_semaphore(%107 : memref<!tpu.dma_semaphore, #tpu.memory_space<semaphore_mem>>)
        %c6_i32 = arith.constant 6 : i32
        %108 = arith.addi %47, %c6_i32 : i32
        %109 = arith.addi %43, %108 : i32
        %110 = arith.index_cast %109 : i32 to index
        %111 = memref.load %arg1[%110] : memref<512xi32, #tpu.memory_space<smem>>
        %c0_i32_47 = arith.constant 0 : i32
        %112 = tpu.memref_slice %arg3[%111, %c0_i32_47] : memref<320x128xf32, #tpu.memory_space<any>> -> memref<1x128xf32, #tpu.memory_space<any>>
        %113 = tpu.memref_squeeze %112 : memref<1x128xf32, #tpu.memory_space<any>> -> memref<128xf32, #tpu.memory_space<any>>
        %c0_i32_48 = arith.constant 0 : i32
        %114 = tpu.memref_slice %arg6[%42, %108, %c0_i32_48] : memref<2x128x128xf32, #tpu.memory_space<vmem>> -> memref<1x1x128xf32, #tpu.memory_space<vmem>>
        %115 = tpu.memref_squeeze %114 : memref<1x1x128xf32, #tpu.memory_space<vmem>> -> memref<128xf32, #tpu.memory_space<vmem>>
        %116 = tpu.memref_slice %arg7[%42] : memref<2x!tpu.dma_semaphore, #tpu.memory_space<semaphore_mem>> -> memref<1x!tpu.dma_semaphore, #tpu.memory_space<semaphore_mem>>
        %117 = tpu.memref_squeeze %116 : memref<1x!tpu.dma_semaphore, #tpu.memory_space<semaphore_mem>> -> memref<!tpu.dma_semaphore, #tpu.memory_space<semaphore_mem>>
        tpu.enqueue_dma source(%113 : memref<128xf32, #tpu.memory_space<any>>) target(%115 : memref<128xf32, #tpu.memory_space<vmem>>) target_semaphore(%117 : memref<!tpu.dma_semaphore, #tpu.memory_space<semaphore_mem>>)
        %c7_i32 = arith.constant 7 : i32
        %118 = arith.addi %47, %c7_i32 : i32
        %119 = arith.addi %43, %118 : i32
        %120 = arith.index_cast %119 : i32 to index
        %121 = memref.load %arg1[%120] : memref<512xi32, #tpu.memory_space<smem>>
        %c0_i32_49 = arith.constant 0 : i32
        %122 = tpu.memref_slice %arg3[%121, %c0_i32_49] : memref<320x128xf32, #tpu.memory_space<any>> -> memref<1x128xf32, #tpu.memory_space<any>>
        %123 = tpu.memref_squeeze %122 : memref<1x128xf32, #tpu.memory_space<any>> -> memref<128xf32, #tpu.memory_space<any>>
        %c0_i32_50 = arith.constant 0 : i32
        %124 = tpu.memref_slice %arg6[%42, %118, %c0_i32_50] : memref<2x128x128xf32, #tpu.memory_space<vmem>> -> memref<1x1x128xf32, #tpu.memory_space<vmem>>
        %125 = tpu.memref_squeeze %124 : memref<1x1x128xf32, #tpu.memory_space<vmem>> -> memref<128xf32, #tpu.memory_space<vmem>>
        %126 = tpu.memref_slice %arg7[%42] : memref<2x!tpu.dma_semaphore, #tpu.memory_space<semaphore_mem>> -> memref<1x!tpu.dma_semaphore, #tpu.memory_space<semaphore_mem>>
        %127 = tpu.memref_squeeze %126 : memref<1x!tpu.dma_semaphore, #tpu.memory_space<semaphore_mem>> -> memref<!tpu.dma_semaphore, #tpu.memory_space<semaphore_mem>>
        tpu.enqueue_dma source(%123 : memref<128xf32, #tpu.memory_space<any>>) target(%125 : memref<128xf32, #tpu.memory_space<vmem>>) target_semaphore(%127 : memref<!tpu.dma_semaphore, #tpu.memory_space<semaphore_mem>>)
      }
      %c16_i32_28 = arith.constant 16 : i32
    } else {
    }
    %c2_i32 = arith.constant 2 : i32
    %c0_i32_2 = arith.constant 0 : i32
    %7 = arith.cmpi eq, %c2_i32, %c0_i32_2 : i32
    %c1_i32_3 = arith.constant 1 : i32
    %8 = arith.select %7, %c1_i32_3, %c2_i32 : i32
    %9 = arith.remsi %arg0, %8 : i32
    %c0_i32_4 = arith.constant 0 : i32
    %10 = arith.cmpi ne, %9, %c0_i32_4 : i32
    %c0_i32_5 = arith.constant 0 : i32
    %11 = arith.cmpi slt, %9, %c0_i32_5 : i32
    %c0_i32_6 = arith.constant 0 : i32
    %12 = arith.cmpi slt, %8, %c0_i32_6 : i32
    %13 = arith.xori %11, %12 : i1
    %14 = arith.andi %13, %10 : i1
    %15 = arith.addi %9, %8 : i32
    %16 = arith.select %14, %15, %9 : i32
    %c0_i32_7 = arith.constant 0 : i32
    %c0_i32_8 = arith.constant 0 : i32
    %17 = tpu.memref_slice %arg6[%16, %c0_i32_7, %c0_i32_8] : memref<2x128x128xf32, #tpu.memory_space<vmem>> -> memref<1x128x128xf32, #tpu.memory_space<vmem>>
    %18 = tpu.memref_squeeze %17 : memref<1x128x128xf32, #tpu.memory_space<vmem>> -> memref<128x128xf32, #tpu.memory_space<vmem>>
    %c0_i32_9 = arith.constant 0 : i32
    %c0_i32_10 = arith.constant 0 : i32
    %19 = tpu.memref_slice %arg6[%16, %c0_i32_9, %c0_i32_10] : memref<2x128x128xf32, #tpu.memory_space<vmem>> -> memref<1x128x128xf32, #tpu.memory_space<vmem>>
    %20 = tpu.memref_squeeze %19 : memref<1x128x128xf32, #tpu.memory_space<vmem>> -> memref<128x128xf32, #tpu.memory_space<vmem>>
    %21 = tpu.memref_slice %arg7[%16] : memref<2x!tpu.dma_semaphore, #tpu.memory_space<semaphore_mem>> -> memref<1x!tpu.dma_semaphore, #tpu.memory_space<semaphore_mem>>
    %22 = tpu.memref_squeeze %21 : memref<1x!tpu.dma_semaphore, #tpu.memory_space<semaphore_mem>> -> memref<!tpu.dma_semaphore, #tpu.memory_space<semaphore_mem>>
    tpu.wait_dma2 semaphore(%22 : memref<!tpu.dma_semaphore, #tpu.memory_space<semaphore_mem>>) src(%18 : memref<128x128xf32, #tpu.memory_space<vmem>>) dst(%20 : memref<128x128xf32, #tpu.memory_space<vmem>>)
    %c0 = arith.constant 0 : index
    %c0_11 = arith.constant 0 : index
    %23 = vector.load %arg2[%c0, %c0_11] : memref<128x16xf32, #tpu.memory_space<vmem>>, vector<128x16xf32>
    %c0_12 = arith.constant 0 : index
    %c0_13 = arith.constant 0 : index
    %24 = vector.load %arg4[%c0_12, %c0_13] : memref<16x128xf32, #tpu.memory_space<vmem>>, vector<16x128xf32>
    %cst = arith.constant dense<0.000000e+00> : vector<128x128xf32>
    %25 = tpu.matmul %23, %24, %cst {dimension_numbers = #tpu.dot_dimension_numbers<[1], [0], [0], [1], [0, 0, 1, 1], [], []>} : vector<128x16xf32>, vector<16x128xf32>, vector<128x128xf32> -> vector<128x128xf32>
    %26 = arith.index_cast %16 : i32 to index
    %c0_14 = arith.constant 0 : index
    %c0_15 = arith.constant 0 : index
    %27 = vector.load %arg6[%26, %c0_14, %c0_15] : memref<2x128x128xf32, #tpu.memory_space<vmem>>, vector<1x128x128xf32>
    %28 = vector.shape_cast %27 : vector<1x128x128xf32> to vector<128x128xf32>
    %29 = arith.addf %28, %25 : vector<128x128xf32>
    %c0_16 = arith.constant 0 : index
    %c0_17 = arith.constant 0 : index
    %30 = vector.load %arg5[%c0_16, %c0_17] : memref<128x128xf32, #tpu.memory_space<vmem>>, vector<128x128xf32>
    tpu.vector_store %arg5[%c0_16, %c0_17], %29 {strides = array<i32>} : memref<128x128xf32, #tpu.memory_space<vmem>>, vector<128x128xf32>,
    return
  }
  func.func @transform_0(%arg0: i32, %arg1: memref<512xi32, #tpu.memory_space<smem>>) -> (i32, i32) {
    %c0_i32 = arith.constant 0 : i32
    %c0_i32_0 = arith.constant 0 : i32
    return %arg0, %c0_i32 : i32, i32
  }
  func.func @transform_2(%arg0: i32, %arg1: memref<512xi32, #tpu.memory_space<smem>>) -> (i32, i32) {
    %c0_i32 = arith.constant 0 : i32
    %c0_i32_0 = arith.constant 0 : i32
    %c0_i32_1 = arith.constant 0 : i32
    return %c0_i32, %c0_i32_0 : i32, i32
  }
  func.func @transform_3(%arg0: i32, %arg1: memref<512xi32, #tpu.memory_space<smem>>) -> (i32, i32) {
    %c0_i32 = arith.constant 0 : i32
    %c0_i32_0 = arith.constant 0 : i32
    return %arg0, %c0_i32 : i32, i32
  }
}

</mosaic_0001>

<bundles_post_ra>
// kernel: tpu_custom_call.1
= control target key start
LH: loop header
LB: loop body
LE: loop exit
PB: predicated region body
PF: predicated region fallthrough
CT: control target
= control target key end

     0   :  { %s2287_s0 = inlined_call_operand.vmem [shape: s32[512], index: 0, kind: input, shape index: {}]   ;;  %s2288_s1 = inlined_call_operand.vmem [shape: f32[512,16], index: 1, kind: input, shape index: {}]   ;;  %s2289_s2 = inlined_call_operand.vmem [shape: f32[320,128], index: 2, kind: input, shape index: {}]   ;;  %s2290_s3 = inlined_call_operand.vmem [shape: f32[16,128], index: 3, kind: input, shape index: {}]   ;;  %s2291_s4 = inlined_call_operand.hbm [shape: f32[512,128], index: 4, kind: output, shape index: {}]  }
   0x1   :  { %2294 = sst [smem:[#allocation28_spill]] %s2288_s1  ;;  %s9_s17 = sshll.u32 %s2287_s0, 4  ;;  %s10_s17 = int_to_ptr.vmem [resolvable:$true] %s9_s17 }
   0x2   :  { %s1841_s18 = scalar_lea.vmem %s10_s17, 64  ;;  %p1846_p1 = scmp.lt.s32.totalorder %s10_s17, %s10_s17 }
   0x3   :  { %p1842_p0 = scmp.ne.s32.totalorder %s10_s17, %s1841_s18  ;;  %p1847_p2 = scmp.lt.s32.totalorder %s1841_s18, %s1841_s18 }
   0x5   :  { %p1848_p3 = por %p1847_p2, %p1846_p1 }
   0x7   :  { %p1849_p4 = pnand %p1848_p3, %p1842_p0 }
   0x9   :  { %1852 = shalt.err (!%p1849_p4)  }
   0xa   :  { %s1935_s19 = smov [#allocation5]  }
   0xb   :  { %12 = dma.vmem_to_smem %s10_s17, 64, %s1935_s19, [#allocation4] }
   0xc   :  { %1903 = dma.done.wait [#allocation4], 64 }
   0xd   :  { %1904 = vsyncadd [#allocation4], 4294967232 }
   0xe   :  { %14 = sfence }
   0xf   :  { %15 = vsyncpa [#allocation7], 0 }
  0x10   :  { %17 = vsyncpa [#allocation7 + $0x1], 0  ;;  %s1967_s20 = smov 0   ;;  %s1969_s21 = smov 0  }
  0x11   :  { %s1971_s0 = smov 0   ;;  %s1973_s22 = smov 0  }
  0x12 LB: > { %s1988_s23 = sadd.s32 4294967295, %s1925_s22   ;;  %s1638_s24 = sadd.s32 4294967294, %s1925_s22   ;;  %s1925_s22 = sphi %s1973_s22, %s2304_s22   ;;  %s1921_s0 = sphi %s1971_s0, %s2303_s0   ;;  %s1917_s21 = sphi %s1969_s21, %s2302_s21   ;;  %s1913_s20 = sphi %s1967_s20, %s2301_s20  }
  0x13   : > { %s1992_s25 = sadd.s32 1, %s1925_s22   ;;  %s77_s26 = sadd.s32 1, %s1921_s0 }
  0x14   : > { %s74_s27 = ssub.s32 %s1925_s22, %s1992_s25  ;;  %p87_p5 = scmp.ne.s32.totalorder %s1921_s0, %s1917_s21 }
  0x15   : > { %p75_p6 = scmp.eq.s32.totalorder %s74_s27, 0  ;;  %p88_p7 = scmp.eq.s32.totalorder %s1988_s23, 3 }
  0x16   : > { %p93_p8 = scmp.ne.s32.totalorder %s1917_s21, %s1913_s20  ;;  %p94_p9 = scmp.eq.s32.totalorder %s1638_s24, 3 }
  0x17   : > { %s2003_s28 = scalar_select %p75_p6, %s1921_s0, %s77_s26  }
  0x18   : > { %p2005_p10 = por %p88_p7, %p87_p5  ;;  %p2009_p11 = por %p94_p9, %p93_p8 }
  0x19   : > { %p1641_p12 = scmp.ge.s32.totalorder %s1925_s22, 1  ;;  %p124_p13 = scmp.lt.s32.totalorder %s1925_s22, 5 }
  0x1b   : > { %p125_p0 = pnand %p1641_p12, %p124_p13 }
  0x1d   : > { %128 = sbr.rel (%p125_p0) target bundleno = 481 (0x1e1), region = 28 }
  0x22   : > { %s2292_s5 = sand.u32 1, %s1917_s21   ;;  %s1643_s6 = sshll.u32 %s1988_s23, 4 }
  0x23   : > { %s1642_s7 = sshll.u32 %s2292_s5, 7  ;;  %p147_p1 = scmp.lt.s32.totalorder %s1643_s6, 63 }
  0x24   : > { %s2297_s1 = sld [smem:[#allocation28_spill]]  ;;  %s2024_s12 = scalar_lea.vmem [#allocation6], %s1642_s7 }
  0x25   : > { %s2306_s6 = smov (!%p147_p1, %s1643_s6), 63  ;;  %p1645_p2 = scmp.ne.s32.totalorder %s1988_s23, 0 }
  0x26   : > { %s1644_s8 = sshll.u32 %s2306_s6, 3  ;;  %s2027_s13 = smov (!%p1645_p2), 0  }
  0x27   : > { %156 = sbr.rel (%p1645_p2) target bundleno = 132 (0x84), region = 32 }
  0x2a   : > { %s2022_s11 = scalar_lea.vmem %s2297_s1, %s1644_s8 }
  0x2c LB: >> { %s2033_s14 = sshll.u32 %s1929_s13, 3  ;;  %s1929_s13 = sphi %s2027_s13, %s162_s13  }
  0x2d   : >> { %s164_s15 = sld [smem:[#allocation5 + %s2033_s14]]  ;;  %s2040_s19 = scalar_lea.vmem [#allocation2], %s2033_s14 }
  0x33   : >> { %s165_s18 = scalar_lea.vmem %s2289_s2, %s164_s15 }
  0x34   : >> { %v185_v0 = vld [vmem:[%s165_s18] sm:$0x1] }
  0x35   : >> { %186 = vst [vmem:[%s2040_s19] sm:$0x1] %v185_v0 }
  0x36   : >> { %212 = vsyncadd [#allocation3], 16  ;;  %s213_s24 = sadd.s32 1, %s2033_s14 }
  0x37   : >> { %s214_s26 = sld [smem:[#allocation5 + %s213_s24]] }
  0x3d   : >> { %s215_s7 = scalar_lea.vmem %s2289_s2, %s214_s26 }
  0x3e   : >> { %v235_v1 = vld [vmem:[%s215_s7] sm:$0x1] }
  0x3f   : >> { %1649 = vst [vmem:[%s2040_s19 + $0x1] sm:$0x1] %v235_v1 }
  0x40   : >> { %262 = vsyncadd [#allocation3], 16  ;;  %s263_s8 = sadd.s32 2, %s2033_s14 }
  0x41   : >> { %s264_s9 = sld [smem:[#allocation5 + %s263_s8]] }
  0x47   : >> { %s265_s16 = scalar_lea.vmem %s2289_s2, %s264_s9 }
  0x48   : >> { %v285_v2 = vld [vmem:[%s265_s16] sm:$0x1] }
  0x49   : >> { %1652 = vst [vmem:[%s2040_s19 + $0x2] sm:$0x1] %v285_v2 }
  0x4a   : >> { %312 = vsyncadd [#allocation3], 16  ;;  %s313_s17 = sadd.s32 3, %s2033_s14 }
  0x4b   : >> { %s314_s18 = sld [smem:[#allocation5 + %s313_s17]] }
  0x51   : >> { %s315_s27 = scalar_lea.vmem %s2289_s2, %s314_s18 }
  0x52   : >> { %v335_v3 = vld [vmem:[%s315_s27] sm:$0x1] }
  0x53   : >> { %1655 = vst [vmem:[%s2040_s19 + $0x3] sm:$0x1] %v335_v3 }
  0x54   : >> { %362 = vsyncadd [#allocation3], 16  ;;  %s363_s6 = sadd.s32 4, %s2033_s14 }
  0x55   : >> { %s364_s7 = sld [smem:[#allocation5 + %s363_s6]] }
  0x5b   : >> { %s365_s10 = scalar_lea.vmem %s2289_s2, %s364_s7 }
  0x5c   : >> { %v385_v4 = vld [vmem:[%s365_s10] sm:$0x1] }
  0x5d   : >> { %1658 = vst [vmem:[%s2040_s19 + $0x4] sm:$0x1] %v385_v4 }
  0x5e   : >> { %412 = vsyncadd [#allocation3], 16  ;;  %s413_s15 = sadd.s32 5, %s2033_s14 }
  0x5f   : >> { %s414_s16 = sld [smem:[#allocation5 + %s413_s15]] }
  0x65   : >> { %s415_s24 = scalar_lea.vmem %s2289_s2, %s414_s16 }
  0x66   : >> { %v435_v5 = vld [vmem:[%s415_s24] sm:$0x1] }
  0x67   : >> { %1661 = vst [vmem:[%s2040_s19 + $0x5] sm:$0x1] %v435_v5 }
  0x68   : >> { %462 = vsyncadd [#allocation3], 16  ;;  %s463_s26 = sadd.s32 6, %s2033_s14 }
  0x69   : >> { %s464_s27 = sld [smem:[#allocation5 + %s463_s26]] }
  0x6f   : >> { %s465_s8 = scalar_lea.vmem %s2289_s2, %s464_s27 }
  0x70   : >> { %v485_v6 = vld [vmem:[%s465_s8] sm:$0x1] }
  0x71   : >> { %1664 = vst [vmem:[%s2040_s19 + $0x6] sm:$0x1] %v485_v6 }
  0x72   : >> { %512 = vsyncadd [#allocation3], 16  ;;  %s513_s9 = sadd.s32 7, %s2033_s14 }
  0x73   : >> { %s514_s10 = sld [smem:[#allocation5 + %s513_s9]] }
  0x79   : >> { %s515_s17 = scalar_lea.vmem %s2289_s2, %s514_s10 }
  0x7a   : >> { %v535_v7 = vld [vmem:[%s515_s17] sm:$0x1] }
  0x7b   : >> { %1667 = vst [vmem:[%s2040_s19 + $0x7] sm:$0x1] %v535_v7 }
  0x7c   : >> { %562 = vsyncadd [#allocation3], 16  ;;  %s162_s13 = sadd.s32 1, %s1929_s13  }
  0x7d   : >> { %p159_p3 = scmp.ge.s32.totalorder %s162_s13, 16  }
  0x7f   : > { %161 = sbr.rel (!%p159_p3) target bundleno = 44 (0x2c), region = 761 }
  0x84 PF: > { %s563_s18 = sadd.s32 1, %s1988_s23 }
  0x85   : > { %p1668_p4 = scmp.ge.s32.totalorder %s563_s18, 4 }
  0x86   : > { %p568_p5 = scmp.lt.s32.totalorder (!%p1668_p4), %s563_s18, 0  ;;  %s569_s14 = ssub.s32 (!%p1668_p4), 0, %s563_s18 }
  0x87   : > { %567 = sbr.rel (%p1668_p4) target bundleno = 241 (0xf1), region = 283  ;;  %s1669_s24 = smin.u32 (!%p1668_p4), %s569_s14, %s563_s18 }
  0x88   : > { %s1730_s26 = sshll.u32 (!%p1668_p4), %s1988_s23, 7  ;;  %s571_s27 = sand.u32 (!%p1668_p4), 1, %s1669_s24  }
  0x89   : > { %s2083_s6 = sadd.s32 (!%p1668_p4), 128, %s1730_s26  ;;  %s572_s19 = ssub.s32 (!%p1668_p4), 0, %s571_s27 }
  0x8a   : > { %s2087_s13 = smov (!%p1668_p4), 0  }
  0x8c   : > { %s2308_s19 = smov (!%p568_p5, %s572_s19), %s571_s27 }
  0x8d   : > { %p1671_p6 = scmp.lt.s32.totalorder %s2308_s19, 0  ;;  %s578_s7 = sadd.s32 2, %s2308_s19 }
  0x8f   : > { %s2310_s7 = smov (!%p1671_p6, %s578_s7), %s2308_s19 }
  0x90   : > { %2298 = sst [smem:[#allocation27_spill]] %s2310_s7 }
  0x91 LB: >> { %s2299_s7 = sld [smem:[#allocation27_spill]]  ;;  %s2093_s8 = sshll.u32 %s1933_s13, 3  ;;  %s1933_s13 = sphi %s2087_s13, %s586_s13  }
  0x92   : >> { %s588_s9 = sadd.s32 %s2083_s6, %s2093_s8 }
  0x93   : >> { %s589_s15 = sld [smem:[#allocation5 + %s588_s9]] }
  0x97   : >> { %s1674_s10 = sshll.u32 %s2299_s7, 7  ;;  %s2106_s26 = scalar_lea.sflag [#allocation3], %s2299_s7 }
  0x98   : >> { %s592_s16 = sadd.s32 %s1674_s10, %s2093_s8 }
  0x99   : >> { %s590_s14 = scalar_lea.vmem %s2289_s2, %s589_s15  ;;  %s2102_s24 = scalar_lea.vmem [#allocation2], %s592_s16 }
  0x9a   : >> { %v613_v8 = vld [vmem:[%s590_s14] sm:$0x1] }
  0x9b   : >> { %614 = vst [vmem:[%s2102_s24] sm:$0x1] %v613_v8 }
  0x9c   : >> { %640 = vsyncadd %s2106_s26, 16  ;;  %s641_s27 = sadd.s32 1, %s2093_s8 }
  0x9d   : >> { %s642_s19 = sadd.s32 %s2083_s6, %s641_s27 }
  0x9e   : >> { %s643_s9 = sld [smem:[#allocation5 + %s642_s19]] }
  0xa4   : >> { %s644_s15 = scalar_lea.vmem %s2289_s2, %s643_s9 }
  0xa5   : >> { %v665_v9 = vld [vmem:[%s644_s15] sm:$0x1] }
  0xa6   : >> { %1678 = vst [vmem:[%s2102_s24 + $0x1] sm:$0x1] %v665_v9 }
  0xa7   : >> { %692 = vsyncadd %s2106_s26, 16  ;;  %s693_s16 = sadd.s32 2, %s2093_s8 }
  0xa8   : >> { %s694_s17 = sadd.s32 %s2083_s6, %s693_s16 }
  0xa9   : >> { %s695_s18 = sld [smem:[#allocation5 + %s694_s17]] }
  0xaf   : >> { %s696_s7 = scalar_lea.vmem %s2289_s2, %s695_s18 }
  0xb0   : >> { %v717_v10 = vld [vmem:[%s696_s7] sm:$0x1] }
  0xb1   : >> { %1682 = vst [vmem:[%s2102_s24 + $0x2] sm:$0x1] %v717_v10 }
  0xb2   : >> { %744 = vsyncadd %s2106_s26, 16  ;;  %s745_s5 = sadd.s32 3, %s2093_s8 }
  0xb3   : >> { %s746_s27 = sadd.s32 %s2083_s6, %s745_s5 }
  0xb4   : >> { %s747_s19 = sld [smem:[#allocation5 + %s746_s27]] }
  0xba   : >> { %s748_s15 = scalar_lea.vmem %s2289_s2, %s747_s19 }
  0xbb   : >> { %v769_v11 = vld [vmem:[%s748_s15] sm:$0x1] }
  0xbc   : >> { %1686 = vst [vmem:[%s2102_s24 + $0x3] sm:$0x1] %v769_v11 }
  0xbd   : >> { %796 = vsyncadd %s2106_s26, 16  ;;  %s797_s1 = sadd.s32 4, %s2093_s8 }
  0xbe   : >> { %s798_s7 = sadd.s32 %s2083_s6, %s797_s1 }
  0xbf   : >> { %s799_s16 = sld [smem:[#allocation5 + %s798_s7]] }
  0xc5   : >> { %s800_s14 = scalar_lea.vmem %s2289_s2, %s799_s16 }
  0xc6   : >> { %v821_v12 = vld [vmem:[%s800_s14] sm:$0x1] }
  0xc7   : >> { %1690 = vst [vmem:[%s2102_s24 + $0x4] sm:$0x1] %v821_v12 }
  0xc8   : >> { %848 = vsyncadd %s2106_s26, 16  ;;  %s849_s5 = sadd.s32 5, %s2093_s8 }
  0xc9   : >> { %s850_s27 = sadd.s32 %s2083_s6, %s849_s5 }
  0xca   : >> { %s851_s19 = sld [smem:[#allocation5 + %s850_s27]] }
  0xd0   : >> { %s852_s15 = scalar_lea.vmem %s2289_s2, %s851_s19 }
  0xd1   : >> { %v873_v13 = vld [vmem:[%s852_s15] sm:$0x1] }
  0xd2   : >> { %1694 = vst [vmem:[%s2102_s24 + $0x5] sm:$0x1] %v873_v13 }
  0xd3   : >> { %900 = vsyncadd %s2106_s26, 16  ;;  %s901_s1 = sadd.s32 6, %s2093_s8 }
  0xd4   : >> { %s902_s7 = sadd.s32 %s2083_s6, %s901_s1 }
  0xd5   : >> { %s903_s16 = sld [smem:[#allocation5 + %s902_s7]] }
  0xdb   : >> { %s904_s14 = scalar_lea.vmem %s2289_s2, %s903_s16 }
  0xdc   : >> { %v925_v14 = vld [vmem:[%s904_s14] sm:$0x1] }
  0xdd   : >> { %1698 = vst [vmem:[%s2102_s24 + $0x6] sm:$0x1] %v925_v14 }
  0xde   : >> { %952 = vsyncadd %s2106_s26, 16  ;;  %s953_s5 = sadd.s32 7, %s2093_s8 }
  0xdf   : >> { %s954_s27 = sadd.s32 %s2083_s6, %s953_s5 }
  0xe0   : >> { %s955_s19 = sld [smem:[#allocation5 + %s954_s27]] }
  0xe6   : >> { %s956_s15 = scalar_lea.vmem %s2289_s2, %s955_s19 }
  0xe7   : >> { %v977_v15 = vld [vmem:[%s956_s15] sm:$0x1] }
  0xe8   : >> { %1702 = vst [vmem:[%s2102_s24 + $0x7] sm:$0x1] %v977_v15 }
  0xe9   : >> { %1004 = vsyncadd %s2106_s26, 16  ;;  %s586_s13 = sadd.s32 1, %s1933_s13  }
  0xea   : >> { %p583_p7 = scmp.ge.s32.totalorder %s586_s13, 16  }
  0xec   : > { %585 = sbr.rel (!%p583_p7) target bundleno = 145 (0x91), region = 772 }
  0xf1 PF: > { %p1005_p8 = scmp.lt.s32.totalorder %s1988_s23, 0  ;;  %s1006_s8 = ssub.s32 0, %s1988_s23 }
  0xf2   : > { %s1703_s1 = smin.u32 %s1988_s23, %s1006_s8 }
  0xf3   : > { %s1008_s7 = sand.u32 1, %s1703_s1  }
  0xf4   : > { %s1009_s16 = ssub.s32 0, %s1008_s7 }
  0xf5   : > { %s2312_s16 = smov (!%p1005_p8, %s1009_s16), %s1008_s7 }
  0xf6   : > { %p1705_p9 = scmp.lt.s32.totalorder %s2312_s16, 0  ;;  %s1015_s17 = sadd.s32 2, %s2312_s16 }
  0xf8   : > { %s2314_s17 = smov (!%p1705_p9, %s1015_s17), %s2312_s16 }
  0xf9   : > { %s1706_s24 = sshll.u32 %s2314_s17, 7  ;;  %s1019_s18 = scalar_lea.sflag [#allocation3], %s2314_s17 }
  0xfa   : > { %s2164_s26 = scalar_lea.vmem [#allocation2], %s1706_s24 }
  0xfb   : > { %1905 = dma.done.wait %s1019_s18, 2048 }
  0xfc   : > { %1906 = vsyncadd %s1019_s18, 4294965248  ;;  %v1040_v16 = vld [vmem:[%s2290_s3 + $0x8] sm:$0xff]  ;;  %v1039_v17 = vld [vmem:[%s2290_s3] sm:$0xff]  ;;  %vm1041_vm0 = vcmask 130048   ;;  %s1297_s27 = sshll.u32 %s2024_s12, 4  ;;  %s1936_s1 = smov [#allocation6]   ;;  %s2239_s27 = int_to_ptr.vmem [resolvable:$true] %s1297_s27 }
  0xfd   : > { %1751 = vmatprep.subr.mxu0 %v1040_v16  ;;  %1779 = vmatprep.subr.mxu1 %v1040_v16  ;;  %v1023_v18 = vld [vmem:[%s2022_s11] sm:$0xff]  ;;  %v1024_v20 = vld [vmem:[%s2022_s11 + $0x8] sm:$0xff]  ;;  %v1025_v22 = vld [vmem:[%s2022_s11 + $0x10] sm:$0xff]  ;;  %s1853_s8 = scalar_lea.vmem %s2239_s27, 2048  ;;  %s1857_s7 = sshll.u32 %s1936_s1, 4  ;;  %s1858_s7 = int_to_ptr.vmem [resolvable:$false] %s1857_s7 }
  0xfe   : > { %1752 = vmatpush3.msra.mxu0 %v1040_v16  ;;  %1781 = vmatpush3.msra.mxu1 %v1040_v16  ;;  %v1031_v19 = vld [vmem:[%s2022_s11 + $0x40] sm:$0xff]  ;;  %v1032_v21 = vld [vmem:[%s2022_s11 + $0x48] sm:$0xff]  ;;  %v1033_v23 = vld [vmem:[%s2022_s11 + $0x50] sm:$0xff]  ;;  %p1854_p12 = scmp.ne.s32.totalorder %s2239_s27, %s1853_s8  ;;  %s1859_s16 = scalar_lea.vmem %s1858_s7, 4096 }
  0xff   : > { %1753 = vmatprep.subr.mxu0 %v1039_v17  ;;  %1780 = vmatprep.subr.mxu1 %v1039_v17  ;;  %v1026_v24 = vld [vmem:[%s2022_s11 + $0x18] sm:$0xff]  ;;  %v1027_v26 = vld [vmem:[%s2022_s11 + $0x20] sm:$0xff]  ;;  %v1028_v28 = vld [vmem:[%s2022_s11 + $0x28] sm:$0xff]  ;;  %p1860_p1 = scmp.lt.s32.totalorder %s2239_s27, %s1858_s7  ;;  %p1861_p2 = scmp.lt.s32.totalorder %s1859_s16, %s1853_s8 }
 0x100   : > { %1754 = vmatpush3.msra.mxu0 %v1039_v17  ;;  %1782 = vmatpush3.msra.mxu1 %v1039_v17  ;;  %v1034_v25 = vld [vmem:[%s2022_s11 + $0x58] sm:$0xff]  ;;  %v1035_v27 = vld [vmem:[%s2022_s11 + $0x60] sm:$0xff]  ;;  %v1036_v29 = vld [vmem:[%s2022_s11 + $0x68] sm:$0xff]  ;;  %p1855_p13 = pnand %p1854_p12, %p2005_p10 }
 0x101   : > { %1755 = vmatprep.mubr.msk.f32.mxu0 %vm1041_vm0, %v1023_v18  ;;  %1767 = vmatprep.mubr.msk.f32.mxu1 %vm1041_vm0, %v1031_v19  ;;  %v1029_v30 = vld [vmem:[%s2022_s11 + $0x30] sm:$0xff]  ;;  %v1030_v32 = vld [vmem:[%s2022_s11 + $0x38] sm:$0xff]  ;;  %v1236_v34 = vld [vmem:[%s2164_s26 + $0x8] sm:$0xff]  ;;  %p1862_p3 = por %p1861_p2, %p1860_p1 }
 0x102   : > { %1756 = vmatmul.mubr.msk.f32.vlgmr.msra.gmra.mxu0 %vm1041_vm0, %v1024_v20  ;;  %1768 = vmatmul.mubr.msk.f32.vlgmr.msra.gmra.mxu1 %vm1041_vm0, %v1032_v21  ;;  %v1037_v31 = vld [vmem:[%s2022_s11 + $0x70] sm:$0xff]  ;;  %v1038_v33 = vld [vmem:[%s2022_s11 + $0x78] sm:$0xff]  ;;  %v1244_v35 = vld [vmem:[%s2164_s26 + $0x48] sm:$0xff]  ;;  %s1732_s11 = sshll.u32 %s1988_s23, 11  ;;  %s2300_s23 = sand.u32 1, %s1917_s21  }
 0x103   : > { %1758 = vmatprep.mubr.msk.f32.mxu0 %vm1041_vm0, %v1025_v22  ;;  %1770 = vmatprep.mubr.msk.f32.mxu1 %vm1041_vm0, %v1033_v23  ;;  %v1235_v38 = vld [vmem:[%s2164_s26] sm:$0xff]  ;;  %v1238_v44 = vld [vmem:[%s2164_s26 + $0x18] sm:$0xff]  ;;  %v1237_v50 = vld [vmem:[%s2164_s26 + $0x10] sm:$0xff]  ;;  %s2237_s10 = scalar_lea.hbm %s2291_s4, %s1732_s11  ;;  %s2247_s15 = scalar_lea.sflag [#allocation7], %s2300_s23 }
 0x104   : > { %v1243_v39 = vld [vmem:[%s2164_s26 + $0x40] sm:$0xff]  ;;  %v1246_v45 = vld [vmem:[%s2164_s26 + $0x58] sm:$0xff]  ;;  %v1245_v51 = vld [vmem:[%s2164_s26 + $0x50] sm:$0xff]  ;;  %p1856_p0 = pneg %p1855_p13 }
 0x105   : > { %v1240_v56 = vld [vmem:[%s2164_s26 + $0x28] sm:$0xff]  ;;  %v1239_v62 = vld [vmem:[%s2164_s26 + $0x20] sm:$0xff]  ;;  %v1242_v4 = vld [vmem:[%s2164_s26 + $0x38] sm:$0xff] }
 0x106   : > { %1759 = vmatmul.mubr.msk.f32.gmra.mxu0 %vm1041_vm0, %v1026_v24  ;;  %1771 = vmatmul.mubr.msk.f32.gmra.mxu1 %vm1041_vm0, %v1034_v25  ;;  %v1248_v57 = vld [vmem:[%s2164_s26 + $0x68] sm:$0xff]  ;;  %v1247_v63 = vld [vmem:[%s2164_s26 + $0x60] sm:$0xff]  ;;  %v1250_v5 = vld [vmem:[%s2164_s26 + $0x78] sm:$0xff]  ;;  %p1863_p4 = pnand %p1862_p3, %p1856_p0 }
 0x107   : > { %1761 = vmatprep.mubr.msk.f32.mxu0 %vm1041_vm0, %v1027_v26  ;;  %1773 = vmatprep.mubr.msk.f32.mxu1 %vm1041_vm0, %v1035_v27  ;;  %v1241_v10 = vld [vmem:[%s2164_s26 + $0x30] sm:$0xff] }
 0x108   : > { %v1249_v11 = vld [vmem:[%s2164_s26 + $0x70] sm:$0xff] }
 0x10a   : > { %1762 = vmatmul.mubr.msk.f32.gmra.mxu0 %vm1041_vm0, %v1028_v28  ;;  %1774 = vmatmul.mubr.msk.f32.gmra.mxu1 %vm1041_vm0, %v1036_v29 }
 0x10b   : > { %1764 = vmatprep.mubr.msk.f32.mxu0 %vm1041_vm0, %v1029_v30  ;;  %1776 = vmatprep.mubr.msk.f32.mxu1 %vm1041_vm0, %v1037_v31 }
 0x10e   : > { %1765 = vmatmul.mubr.msk.f32.gmra.mxu0 %vm1041_vm0, %v1030_v32  ;;  %1777 = vmatmul.mubr.msk.f32.gmra.mxu1 %vm1041_vm0, %v1038_v33 }
 0x1c2   : > { %v1757_v36 = vpop.f32.mrf.mxu0  ;;  %v1769_v37 = vpop.f32.mrf.mxu1 }
 0x1c3   : > { %v1252_v40 = vadd.f32 %v1757_v36, %v1236_v34  ;;  %v1260_v41 = vadd.f32 %v1769_v37, %v1244_v35 }
 0x1c4   : > { %v1156_v42 = vpop.f32.mrf.mxu0  ;;  %v1196_v43 = vpop.f32.mrf.mxu1 }
 0x1c5   : > { %1268 = vst [vmem:[%s2024_s12 + $0x8] sm:$0xff] %v1252_v40  ;;  %1276 = vst [vmem:[%s2024_s12 + $0x48] sm:$0xff] %v1260_v41  ;;  %v1251_v46 = vadd.f32 %v1235_v38, %v1156_v42  ;;  %v1259_v47 = vadd.f32 %v1243_v39, %v1196_v43 }
 0x1c6   : > { %v1760_v48 = vpop.f32.mrf.mxu0  ;;  %v1772_v49 = vpop.f32.mrf.mxu1 }
 0x1c7   : > { %1267 = vst [vmem:[%s2024_s12] sm:$0xff] %v1251_v46  ;;  %1275 = vst [vmem:[%s2024_s12 + $0x40] sm:$0xff] %v1259_v47  ;;  %v1254_v52 = vadd.f32 %v1760_v48, %v1238_v44  ;;  %v1262_v53 = vadd.f32 %v1772_v49, %v1246_v45 }
 0x1c8   : > { %v1166_v54 = vpop.f32.mrf.mxu0  ;;  %v1206_v55 = vpop.f32.mrf.mxu1 }
 0x1c9   : > { %1270 = vst [vmem:[%s2024_s12 + $0x18] sm:$0xff] %v1254_v52  ;;  %1278 = vst [vmem:[%s2024_s12 + $0x58] sm:$0xff] %v1262_v53  ;;  %v1253_v58 = vadd.f32 %v1237_v50, %v1166_v54  ;;  %v1261_v59 = vadd.f32 %v1245_v51, %v1206_v55 }
 0x1ca   : > { %v1763_v60 = vpop.f32.mrf.mxu0  ;;  %v1775_v61 = vpop.f32.mrf.mxu1 }
 0x1cb   : > { %1269 = vst [vmem:[%s2024_s12 + $0x10] sm:$0xff] %v1253_v58  ;;  %1277 = vst [vmem:[%s2024_s12 + $0x50] sm:$0xff] %v1261_v59  ;;  %v1256_v0 = vadd.f32 %v1763_v60, %v1240_v56  ;;  %v1264_v1 = vadd.f32 %v1775_v61, %v1248_v57 }
 0x1cc   : > { %v1176_v2 = vpop.f32.mrf.mxu0  ;;  %v1216_v3 = vpop.f32.mrf.mxu1 }
 0x1cd   : > { %1272 = vst [vmem:[%s2024_s12 + $0x28] sm:$0xff] %v1256_v0  ;;  %1280 = vst [vmem:[%s2024_s12 + $0x68] sm:$0xff] %v1264_v1  ;;  %v1255_v6 = vadd.f32 %v1239_v62, %v1176_v2  ;;  %v1263_v7 = vadd.f32 %v1247_v63, %v1216_v3 }
 0x1ce   : > { %v1766_v8 = vpop.f32.mrf.mxu0  ;;  %v1778_v9 = vpop.f32.mrf.mxu1 }
 0x1cf   : > { %1271 = vst [vmem:[%s2024_s12 + $0x20] sm:$0xff] %v1255_v6  ;;  %1279 = vst [vmem:[%s2024_s12 + $0x60] sm:$0xff] %v1263_v7  ;;  %v1258_v12 = vadd.f32 %v1766_v8, %v1242_v4  ;;  %v1266_v13 = vadd.f32 %v1778_v9, %v1250_v5 }
 0x1d0   : > { %v1186_v14 = vpop.f32.mrf.mxu0  ;;  %v1226_v15 = vpop.f32.mrf.mxu1 }
 0x1d1   : > { %1274 = vst [vmem:[%s2024_s12 + $0x38] sm:$0xff] %v1258_v12  ;;  %1282 = vst [vmem:[%s2024_s12 + $0x78] sm:$0xff] %v1266_v13  ;;  %v1257_v16 = vadd.f32 %v1241_v10, %v1186_v14  ;;  %v1265_v17 = vadd.f32 %v1249_v11, %v1226_v15 }
 0x1d3   : > { %1273 = vst [vmem:[%s2024_s12 + $0x30] sm:$0xff] %v1257_v16  ;;  %1281 = vst [vmem:[%s2024_s12 + $0x70] sm:$0xff] %v1265_v17 }
 0x1d4   : > { %1866 = shalt.err (!%p1863_p4)
}
 0x1d5   : > { %s1867_s12 = scalar_lea.hbm %s2237_s10, 2048  ;;  %s1871_s26 = scalar_lea.hbm %s2291_s4, 8192 }
 0x1d6   : > { %p1868_p5 = scmp.ne.s32.totalorder %s2237_s10, %s1867_s12  ;;  %p1872_p8 = scmp.lt.s32.totalorder %s2237_s10, %s2291_s4 }
 0x1d7   : > { %p1873_p9 = scmp.lt.s32.totalorder %s1871_s26, %s1867_s12 }
 0x1d8   : > { %p1869_p6 = pnand %p1868_p5, %p2005_p10 }
 0x1d9   : > { %p1874_p12 = por %p1873_p9, %p1872_p8 }
 0x1da   : > { %p1870_p7 = pneg %p1869_p6 }
 0x1dc   : > { %p1875_p13 = pnand %p1874_p12, %p1870_p7 }
 0x1de   : > { %1878 = shalt.err (!%p1875_p13)
}
 0x1df   : > { %s1937_s6 = smov 128   ;;  %s1938_s14 = smov 8  }
 0x1e0   : > { %1783 = dma.vmem_to_hbm [thread:$0]  (%p2005_p10), %s2239_s27, 2048, %s2237_s10, %s2247_s15, %s1937_s6, %s1937_s6, %s1938_s14  }
 0x1e1 PF: > { %p1789_p0 = scmp.ge.s32.totalorder %s1925_s22, 2  ;;  %s1312_s5 = sand.u32 1, %s1913_s20  }
 0x1e2   : > { %s1313_s11 = scalar_lea.sflag [#allocation7], %s1312_s5 }
 0x1e3   : > { %p1786_p1 = pnand %p1789_p0, %p2009_p11 }
 0x1e5   : > { %p1787_p2 = pneg %p1786_p1 }
 0x1e7   : > { %1908 = dma.done.wait (%p1787_p2), %s1313_s11, 2048  }
 0x1e8   : > { %1910 = vsyncadd (%p1787_p2), %s1313_s11, 4294965248  ;;  %p20_p3 = scmp.ge.s32.totalorder %s1992_s25, 6   ;;  %s2301_s20 = smov %s1917_s21 }
 0x1e9   : > { %s2302_s21 = smov %s1921_s0  ;;  %s2303_s0 = smov %s2003_s28 }
 0x1ea   : > { %s2304_s22 = smov %s1992_s25  ;;  %22 = sbr.rel (!%p20_p3) target bundleno = 18 (0x12), region = 783 }
 0x1ef   :  { %1318 = vsyncpa [#allocation7], 1 }
 0x1f0   :  { %1320 = vsyncpa [#allocation7 + $0x1], 1 }
 0x1f1   :  { %1321 = vsyncmov [#allocation3] }
 0x1f4   :  { %s1322_s22 = vpop.sfrf %1321 }
 0x1f5   :  { %p1728_p10 = scmp.ne.s32.totalorder %s1322_s22, 0 }
 0x1f7   :  { %1326 = shalt.err (%p1728_p10)  }
 0x1f8   :  { %1328 = vsyncmov [#allocation3 + $0x1] }
 0x1fb   :  { %s1329_s29 = vpop.sfrf %1328 }
 0x1fc   :  { %p1729_p11 = scmp.ne.s32.totalorder %s1329_s29, 0 }
 0x1fe   :  { %1333 = shalt.err (%p1729_p11)  }

</bundles_post_ra>
